<compile_context>
chip_gen: v7x
topology: tpu7x:2x2x1
jax: 0.10.0
libtpu: 0.0.40
codegen_flags: <defaults>
</compile_context>

<pallas_src>
import functools

import jax
import jax.numpy as jnp
from jax.experimental import pallas as pl
from jax.experimental.pallas import tpu as pltpu


def _bilinear_matrix(in_size: int, out_size: int) -> jnp.ndarray:
    """(out_size, in_size) interpolation matrix, align_corners=True semantics."""
    if out_size == 1 or in_size == 1:
        coord = jnp.zeros((out_size,), dtype=jnp.float32)
    else:
        coord = jnp.arange(out_size, dtype=jnp.float32) * (
            (in_size - 1) / (out_size - 1)
        )
    i0 = jnp.clip(jnp.floor(coord).astype(jnp.int32), 0, in_size - 1)
    i1 = jnp.clip(i0 + 1, 0, in_size - 1)
    w1 = coord - i0.astype(jnp.float32)
    w0 = 1.0 - w1
    oh0 = jax.nn.one_hot(i0, in_size, dtype=jnp.float32)
    oh1 = jax.nn.one_hot(i1, in_size, dtype=jnp.float32)
    return w0[:, None] * oh0 + w1[:, None] * oh1


def _next_pow2(n: int) -> int:
    return 1 << max(0, (n - 1).bit_length())


def _bitonic_ce_pairs(n: int):
    """Compare-exchange schedule of a bitonic sorting network over n (= 2^m)
    slots producing DESCENDING order.  Each (i, j, desc): take slots i < j;
    if desc put max at i / min at j, else min at i / max at j."""
    pairs = []
    kk = 2
    while kk <= n:
        jj = kk // 2
        while jj >= 1:
            for i in range(n):
                l = i ^ jj
                if l > i:
                    pairs.append((i, l, (i & kk) == 0))
            jj //= 2
        kk *= 2
    return pairs


def _upsample_topk_kernel(x_ref, bduh_ref, uwt_ref, o_ref, *, c, toh, k, flat):
    """One (batch, output-row-tile) grid step.

    x_ref   : (1, C*H, W)     per-batch input, channels folded into rows
                              (resident across the row-tile axis)
    bduh_ref: (C*TOH, C*H)    block-diagonal H-interp rows for this row tile
    uwt_ref : (W, OW)         transposed W-interp matrix (full)
    o_ref   : (1, K, TOH, OW) if OW % 128 == 0, else (1, K, TOH*OW) lane-dense
    """
    ow = uwt_ref.shape[1]

    # H-upsample for ALL channels in one MXU pass (contraction dim C*H).
    # Rows of y1 are ordered (channel, tile-local output row).
    y1 = jnp.dot(bduh_ref[...], x_ref[0], preferred_element_type=jnp.float32)
    # W-upsample in one MXU pass (contraction dim W).
    y = jnp.dot(y1, uwt_ref[...], preferred_element_type=jnp.float32)

    # Per-channel slabs: static sublane slices at multiples of TOH (mult. of 8)
    # -> free views, no lane relayout.
    vals = [y[ci * toh:(ci + 1) * toh, :] for ci in range(c)]

    # Top-k over channels via a bitonic compare-exchange network (descending).
    # NOTE: NaN semantics differ from torch.topk (jnp.maximum/minimum propagate
    # NaN, so a NaN channel poisons that position for all K outputs).
    # TODO(synk): for C >~ 16, stage the slabs in a VMEM scratch and drive the
    # network with lax.fori_loop to bound live ranges / code size.
    npad = _next_pow2(c)
    if npad > c:
        pad = jnp.full((toh, ow), -jnp.inf, dtype=jnp.float32)
        vals = vals + [pad] * (npad - c)
    for i, j, desc in _bitonic_ce_pairs(npad):
        hi = jnp.maximum(vals[i], vals[j])
        lo = jnp.minimum(vals[i], vals[j])
        vals[i], vals[j] = (hi, lo) if desc else (lo, hi)

    if flat:
        # OW < 128: single lane-dense store (pays one sublane->lane repack,
        # cheaper than K masked vst.msk slabs).
        o_ref[0] = jnp.stack(vals[:k], axis=0).reshape(k, toh * ow)
    else:
        # OW % 128 == 0: direct unmasked stores, no repack.
        for j in range(k):
            o_ref[0, j, :, :] = vals[j]


def _vmem_budget_and_limit():
    """Per-core VMEM capacity -> (per-call working budget, vmem_limit_bytes)."""
    cap = None
    try:
        info = pltpu.get_tpu_info()
        cap = int(getattr(info, "vmem_capacity_bytes", 0)) or None
    except Exception:
        cap = None
    if cap is None:
        cap = 64 << 20  # conservative default: v7x has 64 MiB/TC (v5e/v6e: 128)
    budget = cap // 2                         # headroom for compiler scratch
    limit = min((cap * 3) // 4, 96 << 20)     # ~48 MiB on v7x, ~96 MiB on v5e/v6e
    return budget, limit


def _pick_row_tile(oh, ow, c, h, w, k, flat, budget_bytes):
    """Pick the output-row tile TOH.

    Legality: TOH divides OH; the block-diag block's sublane dim (C*TOH) is a
    multiple of 8; the output block is legal ((TOH*OW) % 128 == 0 for the
    flattened form, TOH % 8 == 0 for the 4-D form).  TOH == OH (full-extent
    blocks) is the always-legal fallback.  Among budget-fitting candidates we
    prefer an even number of row tiles (megacore balance on v7x) and then the
    largest tile; if nothing fits, use the SMALLEST legal tile (bounds VMEM)
    rather than silently requesting a huge block.
    """
    npad = _next_pow2(c)
    # Tile-invariant resident buffers (per-batch input + W-interp matrix),
    # counted double-buffered to be safe.
    resident = 2 * 4 * (c * h * w + w * ow)
    budget = budget_bytes - resident

    def legal(t):
        if oh % t:
            return False
        if (c * t) % 8:
            return False
        return (t * ow) % 128 == 0 if flat else t % 8 == 0

    def per_step(t):
        bd = 2 * 4 * (c * t) * (c * h)   # double-buffered block-diag row block
        outb = 2 * 4 * k * t * ow        # double-buffered output block
        itm = 4 * (c * t) * (w + ow)     # y1 + y intermediates
        srt = 4 * t * ow * (npad + k)    # sorting-network working slabs
        return bd + outb + itm + srt

    cands = [t for t in range(1, oh + 1) if legal(t)]
    if not cands:
        return oh
    fit = [t for t in cands if per_step(t) <= budget]
    if not fit:
        return min(cands)
    even = [t for t in fit if (oh // t) >= 2 and (oh // t) % 2 == 0]
    if even:
        return max(even)
    multi = [t for t in fit if (oh // t) >= 2]
    return max(multi) if multi else max(fit)


def upsample_topk(x: jnp.ndarray, out_channels: int, *,
                  use_bf16_matmul: bool = False) -> jnp.ndarray:
    """Forward pass of the PyTorch `Upsample` module (NCHW in / NCHW out)."""
    n, c, h, w = x.shape
    oh, ow = 2 * h, 2 * w
    k = int(out_channels)
    assert 1 <= k <= c, "torch.topk requires 1 <= k <= number of channels"

    x = x.astype(jnp.float32)
    x2d = x.reshape(n, c * h, w)        # free reshape: channels fold into rows

    uh = _bilinear_matrix(h, oh)        # (OH, H)
    uwt = _bilinear_matrix(w, ow).T     # (W, OW)

    flat = (ow % 128 != 0)
    budget, vmem_limit = _vmem_budget_and_limit()
    toh = _pick_row_tile(oh, ow, c, h, w, k, flat, budget)
    n_row_tiles = oh // toh

    # Block-diagonal H-interpolation matrix, rows pre-grouped per row tile:
    # row (s, ci, t), col (cj, hh) -> uh[s*TOH + t, hh] if ci == cj else 0.
    # TODO(synk): O(C^2) size/HBM traffic; for large C switch to per-channel
    # dots or build the block-diagonal tile in-kernel.
    eye_c = jnp.eye(c, dtype=jnp.float32)
    bduh = jnp.einsum(
        "ij,sth->sitjh", eye_c, uh.reshape(n_row_tiles, toh, h)
    ).reshape(n_row_tiles * c * toh, c * h)

    if use_bf16_matmul:
        # MXU is bf16-native on v6e/v7x; NOT bit-accurate vs the f32 reference.
        x2d = x2d.astype(jnp.bfloat16)
        bduh = bduh.astype(jnp.bfloat16)
        uwt = uwt.astype(jnp.bfloat16)

    kernel = functools.partial(
        _upsample_topk_kernel, c=c, toh=toh, k=k, flat=flat)

    if flat:
        out_shape = jax.ShapeDtypeStruct((n, k, oh * ow), jnp.float32)
        out_spec = pl.BlockSpec((1, k, toh * ow), lambda b, s: (b, 0, s))
    else:
        out_shape = jax.ShapeDtypeStruct((n, k, oh, ow), jnp.float32)
        out_spec = pl.BlockSpec((1, k, toh, ow), lambda b, s: (b, 0, s, 0))

    def _build(single_buffer: bool):
        resident_kw = {}
        if single_buffer and hasattr(pl, "Buffered"):
            resident_kw = dict(pipeline_mode=pl.Buffered(1))
        in_specs = [
            # Per-batch input: block index ignores the row-tile axis -> DMA'd
            # once per batch, reused across row tiles (single-buffered).
            pl.BlockSpec((1, c * h, w), lambda b, s: (b, 0, 0), **resident_kw),
            pl.BlockSpec((c * toh, c * h), lambda b, s: (s, 0)),
            pl.BlockSpec((w, ow), lambda b, s: (0, 0), **resident_kw),
        ]
        return pl.pallas_call(
            kernel,
            out_shape=out_shape,
            grid_spec=pltpu.PrefetchScalarGridSpec(
                num_scalar_prefetch=0,
                # NOTE: the row-tile axis MUST stay innermost; reordering the
                # grid to (n_row_tiles, n) would re-fetch the per-batch input
                # block every step and make the kernel DMA-bound.
                grid=(n, n_row_tiles),
                in_specs=in_specs,
                out_specs=out_spec,
            ),
            compiler_params=pltpu.CompilerParams(
                # Every (batch, row-tile) step is independent -> both shardable.
                dimension_semantics=("parallel", "parallel"),
                vmem_limit_bytes=vmem_limit,
            ),
        )

    try:
        out = _build(True)(x2d, bduh, uwt)
    except Exception:
        # Fallback for JAX builds that reject pipeline_mode=pl.Buffered(1).
        out = _build(False)(x2d, bduh, uwt)

    return out.reshape(n, k, oh, ow) if flat else out


def _reference(x: jnp.ndarray, out_channels: int) -> jnp.ndarray:
    """Pure-JAX reference for validation."""
    n, c, h, w = x.shape
    oh, ow = 2 * h, 2 * w
    uh = _bilinear_matrix(h, oh)
    uw = _bilinear_matrix(w, ow)
    up = jnp.einsum("ph,nchw,qw->ncpq", uh, x.astype(jnp.float32), uw)
    vals = jax.lax.top_k(up.transpose(0, 2, 3, 1), out_channels)[0]  # (N,OH,OW,K)
    return vals.transpose(0, 3, 1, 2)


if __name__ == "__main__":
    key = jax.random.PRNGKey(0)
    N, C, H, W = 2, 4, 16, 16
    OUT_CHANNELS = 3

    x = jax.random.normal(key, (N, C, H, W), dtype=jnp.float32)

    out = jax.block_until_ready(upsample_topk(x, OUT_CHANNELS))

    ref = _reference(x, OUT_CHANNELS)
    assert out.shape == (N, OUT_CHANNELS, 2 * H, 2 * W), out.shape
    assert jnp.allclose(out, ref, atol=1e-5, rtol=1e-5), (
        float(jnp.max(jnp.abs(out - ref)))
    )

    print("KERNEL_OK")
</pallas_src>

<mosaic_0001>
module attributes {stable_mosaic.version = 11 : i64} {
  func.func @_upsample_topk_kernel(%arg0: i32, %arg1: i32, %arg2: memref<1x64x16xf32, #tpu.memory_space<vmem>>, %arg3: memref<64x64xf32, #tpu.memory_space<vmem>>, %arg4: memref<16x32xf32, #tpu.memory_space<vmem>>, %arg5: memref<1x3x512xf32, #tpu.memory_space<vmem>>) attributes {dimension_semantics = [#tpu.dimension_semantics<parallel>, #tpu.dimension_semantics<parallel>], iteration_bounds = array<i64: 2, 2>, scalar_prefetch = 0 : i64, scratch_operands = 0 : i64, tpu.core_type = #tpu.core_type<tc>, window_params = [{pipeline_mode = #tpu.pipeline_mode<synchronous>, transform_indices = @transform_0, window_bounds = array<i64: 1, 64, 16>}, {transform_indices = @transform_1, window_bounds = array<i64: 64, 64>}, {pipeline_mode = #tpu.pipeline_mode<synchronous>, transform_indices = @transform_2, window_bounds = array<i64: 16, 32>}, {transform_indices = @transform_3, window_bounds = array<i64: 1, 3, 512>}]} {
    %c0 = arith.constant 0 : index
    %c0_0 = arith.constant 0 : index
    %0 = vector.load %arg3[%c0, %c0_0] : memref<64x64xf32, #tpu.memory_space<vmem>>, vector<64x64xf32>
    %c0_1 = arith.constant 0 : index
    %c0_2 = arith.constant 0 : index
    %c0_3 = arith.constant 0 : index
    %1 = vector.load %arg2[%c0_1, %c0_2, %c0_3] : memref<1x64x16xf32, #tpu.memory_space<vmem>>, vector<1x64x16xf32>
    %2 = vector.shape_cast %1 : vector<1x64x16xf32> to vector<64x16xf32>
    %cst = arith.constant dense<0.000000e+00> : vector<64x16xf32>
    %3 = tpu.matmul %0, %2, %cst {dimension_numbers = #tpu.dot_dimension_numbers<[1], [0], [0], [1], [0, 0, 1, 1], [], []>} : vector<64x64xf32>, vector<64x16xf32>, vector<64x16xf32> -> vector<64x16xf32>
    %c0_4 = arith.constant 0 : index
    %c0_5 = arith.constant 0 : index
    %4 = vector.load %arg4[%c0_4, %c0_5] : memref<16x32xf32, #tpu.memory_space<vmem>>, vector<16x32xf32>
    %cst_6 = arith.constant dense<0.000000e+00> : vector<64x32xf32>
    %5 = tpu.matmul %3, %4, %cst_6 {dimension_numbers = #tpu.dot_dimension_numbers<[1], [0], [0], [1], [0, 0, 1, 1], [], []>} : vector<64x16xf32>, vector<16x32xf32>, vector<64x32xf32> -> vector<64x32xf32>
    %6 = vector.extract_strided_slice %5 {offsets = [0, 0], sizes = [16, 32], strides = [1, 1]} : vector<64x32xf32> to vector<16x32xf32>
    %7 = vector.extract_strided_slice %5 {offsets = [16, 0], sizes = [16, 32], strides = [1, 1]} : vector<64x32xf32> to vector<16x32xf32>
    %8 = vector.extract_strided_slice %5 {offsets = [32, 0], sizes = [16, 32], strides = [1, 1]} : vector<64x32xf32> to vector<16x32xf32>
    %9 = vector.extract_strided_slice %5 {offsets = [48, 0], sizes = [16, 32], strides = [1, 1]} : vector<64x32xf32> to vector<16x32xf32>
    %10 = arith.maximumf %6, %7 : vector<16x32xf32>
    %11 = arith.minimumf %6, %7 : vector<16x32xf32>
    %12 = arith.maximumf %8, %9 : vector<16x32xf32>
    %13 = arith.minimumf %8, %9 : vector<16x32xf32>
    %14 = arith.maximumf %10, %13 : vector<16x32xf32>
    %15 = arith.minimumf %10, %13 : vector<16x32xf32>
    %16 = arith.maximumf %11, %12 : vector<16x32xf32>
    %17 = arith.minimumf %11, %12 : vector<16x32xf32>
    %18 = arith.maximumf %14, %16 : vector<16x32xf32>
    %19 = arith.minimumf %14, %16 : vector<16x32xf32>
    %20 = arith.maximumf %15, %17 : vector<16x32xf32>
    %21 = vector.shape_cast %18 : vector<16x32xf32> to vector<1x16x32xf32>
    %22 = vector.shape_cast %19 : vector<16x32xf32> to vector<1x16x32xf32>
    %23 = vector.shape_cast %20 : vector<16x32xf32> to vector<1x16x32xf32>
    %24 = tpu.concatenate %21, %22, %23 in 0 : vector<1x16x32xf32>, vector<1x16x32xf32>, vector<1x16x32xf32> -> vector<3x16x32xf32>
    %25 = vector.shape_cast %24 : vector<3x16x32xf32> to vector<3x512xf32>
    %c0_7 = arith.constant 0 : index
    %c0_8 = arith.constant 0 : index
    %c0_9 = arith.constant 0 : index
    %26 = vector.load %arg5[%c0_7, %c0_8, %c0_9] : memref<1x3x512xf32, #tpu.memory_space<vmem>>, vector<1x3x512xf32>
    %27 = vector.shape_cast %26 : vector<1x3x512xf32> to vector<3x512xf32>
    %28 = vector.shape_cast %25 : vector<3x512xf32> to vector<1x3x512xf32>
    tpu.vector_store %arg5[%c0_7, %c0_8, %c0_9], %28 {strides = array<i32>} : memref<1x3x512xf32, #tpu.memory_space<vmem>>, vector<1x3x512xf32>,
    return
  }
  func.func @transform_0(%arg0: i32, %arg1: i32) -> (i32, i32, i32) {
    %c0_i32 = arith.constant 0 : i32
    %c0_i32_0 = arith.constant 0 : i32
    %c0_i32_1 = arith.constant 0 : i32
    return %arg0, %c0_i32, %c0_i32_0 : i32, i32, i32
  }
  func.func @transform_1(%arg0: i32, %arg1: i32) -> (i32, i32) {
    %c0_i32 = arith.constant 0 : i32
    %c0_i32_0 = arith.constant 0 : i32
    return %arg1, %c0_i32 : i32, i32
  }
  func.func @transform_2(%arg0: i32, %arg1: i32) -> (i32, i32) {
    %c0_i32 = arith.constant 0 : i32
    %c0_i32_0 = arith.constant 0 : i32
    %c0_i32_1 = arith.constant 0 : i32
    return %c0_i32, %c0_i32_0 : i32, i32
  }
  func.func @transform_3(%arg0: i32, %arg1: i32) -> (i32, i32, i32) {
    %c0_i32 = arith.constant 0 : i32
    %c0_i32_0 = arith.constant 0 : i32
    return %arg0, %c0_i32, %arg1 : i32, i32, i32
  }
}

module attributes {stable_mosaic.version = 11 : i64} {
  func.func @_upsample_topk_kernel(%arg0: i32, %arg1: i32, %arg2: memref<1x64x16xf32, #tpu.memory_space<vmem>>, %arg3: memref<64x64xf32, #tpu.memory_space<vmem>>, %arg4: memref<16x32xf32, #tpu.memory_space<vmem>>, %arg5: memref<1x3x512xf32, #tpu.memory_space<vmem>>) attributes {dimension_semantics = [#tpu.dimension_semantics<parallel>, #tpu.dimension_semantics<parallel>], iteration_bounds = array<i64: 2, 2>, scalar_prefetch = 0 : i64, scratch_operands = 0 : i64, tpu.core_type = #tpu.core_type<tc>, window_params = [{transform_indices = @transform_0, window_bounds = array<i64: 1, 64, 16>}, {transform_indices = @transform_1, window_bounds = array<i64: 64, 64>}, {pipeline_mode = #tpu.pipeline_mode<synchronous>, transform_indices = @transform_2, window_bounds = array<i64: 16, 32>}, {transform_indices = @transform_3, window_bounds = array<i64: 1, 3, 512>}]} {
    %c0 = arith.constant 0 : index
    %c0_0 = arith.constant 0 : index
    %0 = vector.load %arg3[%c0, %c0_0] : memref<64x64xf32, #tpu.memory_space<vmem>>, vector<64x64xf32>
    %c0_1 = arith.constant 0 : index
    %c0_2 = arith.constant 0 : index
    %c0_3 = arith.constant 0 : index
    %1 = vector.load %arg2[%c0_1, %c0_2, %c0_3] : memref<1x64x16xf32, #tpu.memory_space<vmem>>, vector<1x64x16xf32>
    %2 = vector.shape_cast %1 : vector<1x64x16xf32> to vector<64x16xf32>
    %cst = arith.constant dense<0.000000e+00> : vector<64x16xf32>
    %3 = tpu.matmul %0, %2, %cst {dimension_numbers = #tpu.dot_dimension_numbers<[1], [0], [0], [1], [0, 0, 1, 1], [], []>} : vector<64x64xf32>, vector<64x16xf32>, vector<64x16xf32> -> vector<64x16xf32>
    %c0_4 = arith.constant 0 : index
    %c0_5 = arith.constant 0 : index
    %4 = vector.load %arg4[%c0_4, %c0_5] : memref<16x32xf32, #tpu.memory_space<vmem>>, vector<16x32xf32>
    %cst_6 = arith.constant dense<0.000000e+00> : vector<64x32xf32>
    %5 = tpu.matmul %3, %4, %cst_6 {dimension_numbers = #tpu.dot_dimension_numbers<[1], [0], [0], [1], [0, 0, 1, 1], [], []>} : vector<64x16xf32>, vector<16x32xf32>, vector<64x32xf32> -> vector<64x32xf32>
    %6 = vector.extract_strided_slice %5 {offsets = [0, 0], sizes = [16, 32], strides = [1, 1]} : vector<64x32xf32> to vector<16x32xf32>
    %7 = vector.extract_strided_slice %5 {offsets = [16, 0], sizes = [16, 32], strides = [1, 1]} : vector<64x32xf32> to vector<16x32xf32>
    %8 = vector.extract_strided_slice %5 {offsets = [32, 0], sizes = [16, 32], strides = [1, 1]} : vector<64x32xf32> to vector<16x32xf32>
    %9 = vector.extract_strided_slice %5 {offsets = [48, 0], sizes = [16, 32], strides = [1, 1]} : vector<64x32xf32> to vector<16x32xf32>
    %10 = arith.maximumf %6, %7 : vector<16x32xf32>
    %11 = arith.minimumf %6, %7 : vector<16x32xf32>
    %12 = arith.maximumf %8, %9 : vector<16x32xf32>
    %13 = arith.minimumf %8, %9 : vector<16x32xf32>
    %14 = arith.maximumf %10, %13 : vector<16x32xf32>
    %15 = arith.minimumf %10, %13 : vector<16x32xf32>
    %16 = arith.maximumf %11, %12 : vector<16x32xf32>
    %17 = arith.minimumf %11, %12 : vector<16x32xf32>
    %18 = arith.maximumf %14, %16 : vector<16x32xf32>
    %19 = arith.minimumf %14, %16 : vector<16x32xf32>
    %20 = arith.maximumf %15, %17 : vector<16x32xf32>
    %21 = vector.shape_cast %18 : vector<16x32xf32> to vector<1x16x32xf32>
    %22 = vector.shape_cast %19 : vector<16x32xf32> to vector<1x16x32xf32>
    %23 = vector.shape_cast %20 : vector<16x32xf32> to vector<1x16x32xf32>
    %24 = tpu.concatenate %21, %22, %23 in 0 : vector<1x16x32xf32>, vector<1x16x32xf32>, vector<1x16x32xf32> -> vector<3x16x32xf32>
    %25 = vector.shape_cast %24 : vector<3x16x32xf32> to vector<3x512xf32>
    %c0_7 = arith.constant 0 : index
    %c0_8 = arith.constant 0 : index
    %c0_9 = arith.constant 0 : index
    %26 = vector.load %arg5[%c0_7, %c0_8, %c0_9] : memref<1x3x512xf32, #tpu.memory_space<vmem>>, vector<1x3x512xf32>
    %27 = vector.shape_cast %26 : vector<1x3x512xf32> to vector<3x512xf32>
    %28 = vector.shape_cast %25 : vector<3x512xf32> to vector<1x3x512xf32>
    tpu.vector_store %arg5[%c0_7, %c0_8, %c0_9], %28 {strides = array<i32>} : memref<1x3x512xf32, #tpu.memory_space<vmem>>, vector<1x3x512xf32>,
    return
  }
  func.func @transform_0(%arg0: i32, %arg1: i32) -> (i32, i32, i32) {
    %c0_i32 = arith.constant 0 : i32
    %c0_i32_0 = arith.constant 0 : i32
    %c0_i32_1 = arith.constant 0 : i32
    return %arg0, %c0_i32, %c0_i32_0 : i32, i32, i32
  }
  func.func @transform_1(%arg0: i32, %arg1: i32) -> (i32, i32) {
    %c0_i32 = arith.constant 0 : i32
    %c0_i32_0 = arith.constant 0 : i32
    return %arg1, %c0_i32 : i32, i32
  }
  func.func @transform_2(%arg0: i32, %arg1: i32) -> (i32, i32) {
    %c0_i32 = arith.constant 0 : i32
    %c0_i32_0 = arith.constant 0 : i32
    %c0_i32_1 = arith.constant 0 : i32
    return %c0_i32, %c0_i32_0 : i32, i32
  }
  func.func @transform_3(%arg0: i32, %arg1: i32) -> (i32, i32, i32) {
    %c0_i32 = arith.constant 0 : i32
    %c0_i32_0 = arith.constant 0 : i32
    return %arg0, %c0_i32, %arg1 : i32, i32, i32
  }
}

</mosaic_0001>

<bundles_post_ra>
// kernel: tpu_custom_call.1
= control target key start
LH: loop header
LB: loop body
LE: loop exit
PB: predicated region body
PF: predicated region fallthrough
CT: control target
= control target key end

     0   :  { %s1054_s12 = smov 0   ;;  %s1056_s13 = smov 0   ;;  %s1156_s0 = inlined_call_operand.vmem [shape: f32[2,64,16], index: 0, kind: input, shape index: {}]   ;;  %s1157_s1 = inlined_call_operand.vmem [shape: f32[128,64], index: 1, kind: input, shape index: {}]   ;;  %s1158_s2 = inlined_call_operand.vmem [shape: f32[16,32], index: 2, kind: input, shape index: {}]   ;;  %s1159_s3 = inlined_call_operand.vmem [shape: f32[2,3,1024], index: 3, kind: output, shape index: {}]  }
   0x1   :  { %s1058_s14 = smov 0   ;;  %s1060_s15 = smov 0  }
   0x2   :  { %s1062_s16 = smov 0  }
   0x3 LB: > { %s22_s17 = sadd.s32 1, %s1018_s14  ;;  %s25_s18 = sadd.s32 1, %s1022_s15  ;;  %s1026_s16 = sphi %s1062_s16, %s13_s16   ;;  %s1022_s15 = sphi %s1060_s15, %s1163_s15   ;;  %s1018_s14 = sphi %s1058_s14, %s1162_s14   ;;  %s1014_s13 = sphi %s1056_s13, %s1161_s13   ;;  %s1010_s12 = sphi %s1054_s12, %s1160_s12  }
   0x4   : > { %p23_p0 = scmp.ge.s32.totalorder %s22_s17, 2  ;;  %p825_p1 = scmp.ge.s32.totalorder %s1026_s16, 1 }
   0x5   : > { %p162_p2 = scmp.lt.s32.totalorder %s1026_s16, 5 }
   0x6   : > { %s1165_s17 = smov (%p23_p0, %s22_s17), 0  ;;  %s1167_s18 = smov (!%p23_p0, %s25_s18), %s1022_s15 }
   0x7   : > { %p163_p3 = pnand %p825_p1, %p162_p2  ;;  %p27_p4 = scmp.ge.s32.totalorder %s1167_s18, 2 }
   0x8   : > { %p195_p5 = scmp.lt.s32.totalorder (!%p163_p3), %s1014_s13, 1  ;;  %s828_s19 = sshll.u32 (!%p163_p3), %s1010_s12, 3  ;;  %v362_v0 = vld [vmem:[%s1158_s2] sm:$0xff] (!%p163_p3)  ;;  %v363_v1 = vld [vmem:[%s1158_s2 + $0x8] sm:$0xff] (!%p163_p3)  ;;  %vm232_vm0 = vcmask (!%p163_p3), 523264   ;;  %vm364_vm1 = vcmask (!%p163_p3), 130048   ;;  %v521_v43 = vlaneseq (!%p163_p3) }
   0x9   : > { %s1169_s18 = smov (%p27_p4, %s1167_s18), 0  ;;  %166 = sbr.rel (%p163_p3) target bundleno = 629 (0x275), region = 32 }
   0xa   : > { %p201_p6 = scmp.lt.s32.totalorder (!%p163_p3), %s828_s19, 15  ;;  %v938_v2 = vpack.c.bf16 (!%p163_p3), %v363_v1, %v362_v0  ;;  %v1028_v41 = vmov (!%p163_p3), 1983009808   ;;  %v1029_v44 = vmov (!%p163_p3), 1934713408   ;;  %v522_v51 = vshrl.u32 (!%p163_p3), %v521_v43, 7 }
   0xb   : > { %v519_v42 = vunpack.c.l.s4 (!%p163_p3), %v1028_v41  ;;  %v550_v45 = vunpack.c.l.s4 (!%p163_p3), %v1029_v44  ;;  %s1031_s5 = smov (!%p163_p3), 64   ;;  %s1032_s6 = smov (!%p163_p3), 32   ;;  %vm698_vm2 = vcmask (!%p163_p3), 261120   ;;  %vm701_vm3 = vcmask (!%p163_p3), 785408  }
   0xc   : > { %939 = vmatprep.subr.bf16.mxu1 (!%p163_p3), %v938_v2  ;;  %s1033_s7 = smov (!%p163_p3), 96   ;;  %s830_s8 = sshll.u32 (!%p163_p3), %s1010_s12, 2 }
   0xd   : > { %941 = vmatpush3.bf16.msra.mxu1 (!%p163_p3), %v938_v2  ;;  %v520_v50 = vunpack.c.0.s8 (!%p163_p3), %v519_v42  ;;  %v551_v54 = vunpack.c.0.s8 (!%p163_p3), %v550_v45  ;;  %p209_p7 = scmp.lt.s32.totalorder (!%p163_p3), %s830_s8, 7 }
   0xf   : > { %v523_v2 = vsub.s32 (!%p163_p3), %v520_v50, %v522_v51 }
  0x10   : > { %s1171_s13 = smov (!%p195_p5, %s1014_s13), 1  ;;  %s1173_s19 = smov (!%p201_p6, %s828_s19), 15 }
  0x11   : > { %s851_s24 = sshll.u32 %s1171_s13, 6  ;;  %s829_s28 = sshll.u32 %s1173_s19, 3 }
  0x12   : > { %s199_s27 = scalar_lea.vmem %s1156_s0, %s851_s24  ;;  %s1102_s4 = scalar_lea.vmem %s1157_s1, %s829_s28 }
  0x13   : > { %v224_v3 = vld [vmem:[%s199_s27] sm:$0xff]  ;;  %v225_v4 = vld [vmem:[%s199_s27 + $0x8] sm:$0xff]  ;;  %v226_v5 = vld [vmem:[%s199_s27 + $0x10] sm:$0xff]  ;;  %s1175_s8 = smov (!%p209_p7, %s830_s8), 7  ;;  %s831_s9 = sshll.u32 %s1171_s13, 3 }
  0x14   : > { %v922_v6 = vpack.c.bf16 %v225_v4, %v224_v3  ;;  %v227_v7 = vld [vmem:[%s199_s27 + $0x18] sm:$0xff]  ;;  %v228_v9 = vld [vmem:[%s199_s27 + $0x20] sm:$0xff]  ;;  %v229_v10 = vld [vmem:[%s199_s27 + $0x28] sm:$0xff]  ;;  %s212_s10 = sadd.s32 %s831_s9, %s1175_s8 }
  0x15   : > { %v926_v8 = vpack.c.bf16 %v227_v7, %v226_v5  ;;  %v216_v11 = vld [vmem:[%s1102_s4] sm:$0xff]  ;;  %v930_v12 = vpack.c.bf16 %v229_v10, %v228_v9  ;;  %v230_v13 = vld [vmem:[%s199_s27 + $0x30] sm:$0xff]  ;;  %v231_v14 = vld [vmem:[%s199_s27 + $0x38] sm:$0xff]  ;;  %v1030_v7 = vmov 0.0   ;;  %s832_s11 = sshll.u32 %s212_s10, 2 }
  0x16   : > { %923 = vmatprep.subr.bf16.mxu0 %v922_v6  ;;  %894 = vmatprep.mubr.msk.f32.mxu0 %vm232_vm0, %v216_v11  ;;  %v934_v15 = vpack.c.bf16 %v231_v14, %v230_v13  ;;  %v217_v16 = vld [vmem:[%s1102_s4 + $0x8] sm:$0xff]  ;;  %v218_v17 = vld [vmem:[%s1102_s4 + $0x10] sm:$0xff]  ;;  %v219_v18 = vld [vmem:[%s1102_s4 + $0x18] sm:$0xff]  ;;  %v554_v13 = vsub.s32 %v551_v54, %v522_v51  ;;  %s214_s19 = scalar_lea.vmem %s1159_s3, %s832_s11 }
  0x17   : > { %925 = vmatpush3.bf16.msra.mxu0 %v922_v6  ;;  %v220_v19 = vld [vmem:[%s1102_s4 + $0x20] sm:$0xff]  ;;  %v221_v20 = vld [vmem:[%s1102_s4 + $0x28] sm:$0xff]  ;;  %v222_v21 = vld [vmem:[%s1102_s4 + $0x30] sm:$0xff] }
  0x18   : > { %927 = vmatprep.subr.bf16.mxu0 %v926_v8  ;;  %v223_v22 = vld [vmem:[%s1102_s4 + $0x38] sm:$0xff] }
  0x1b   : > { %929 = vmatpush3.bf16.msra.mxu0 %v926_v8 }
  0x1c   : > { %931 = vmatprep.subr.bf16.mxu0 %v930_v12 }
  0x1f   : > { %933 = vmatpush3.bf16.msra.mxu0 %v930_v12 }
  0x20   : > { %935 = vmatprep.subr.bf16.mxu0 %v934_v15 }
  0x23   : > { %937 = vmatpush3.bf16.msra.mxu0 %v934_v15 }
  0x26   : > { %895 = vmatmul.mubr.msk.f32.vlgmr.msra.gmra.mrb[0].mxu0 %vm232_vm0, %v217_v16 }
  0x27   : > { %897 = vmatprep.mubr.msk.f32.mxu0 %vm232_vm0, %v218_v17 }
  0x2a   : > { %898 = vmatmul.mubr.msk.f32.gmra.mrb[2].mxu0 %vm232_vm0, %v219_v18 }
  0x2b   : > { %900 = vmatprep.mubr.msk.f32.mxu0 %vm232_vm0, %v220_v19 }
  0x2e   : > { %901 = vmatmul.mubr.msk.f32.gmra.mrb[4].mxu0 %vm232_vm0, %v221_v20 }
  0x2f   : > { %903 = vmatprep.mubr.msk.f32.mxu0 %vm232_vm0, %v222_v21 }
  0x32   : > { %904 = vmatmul.mubr.msk.f32.gmra.mrb[6].mxu0 %vm232_vm0, %v223_v22 }
  0xf9   : > { %v896_v23 = vpop.f32.mrb[0].mxu0 }
  0xfa   : > { %v323_v24 = vpop.f32.mrb[1].mxu0 }
  0xfb   : > { %910 = vmatprep.mubr.msk.f32.mxu1 %vm364_vm1, %v323_v24 }
  0xfc   : > { %911 = vmatmul.mubr.msk.f32.vlgmr.msra.gmra.mrb[0].mxu1 %vm364_vm1, %v896_v23 }
  0xfd   : > { %v899_v25 = vpop.f32.mrb[2].mxu0 }
  0xfe   : > { %v333_v26 = vpop.f32.mrb[3].mxu0 }
  0xff   : > { %913 = vmatprep.mubr.msk.f32.mxu1 %vm364_vm1, %v333_v26 }
 0x100   : > { %914 = vmatmul.mubr.msk.f32.gmra.mrb[2].mxu1 %vm364_vm1, %v899_v25 }
 0x101   : > { %v902_v27 = vpop.f32.mrb[4].mxu0 }
 0x102   : > { %v343_v28 = vpop.f32.mrb[5].mxu0 }
 0x103   : > { %916 = vmatprep.mubr.msk.f32.mxu1 %vm364_vm1, %v343_v28 }
 0x104   : > { %917 = vmatmul.mubr.msk.f32.gmra.mrb[4].mxu1 %vm364_vm1, %v902_v27 }
 0x105   : > { %v905_v29 = vpop.f32.mrb[6].mxu0 }
 0x106   : > { %v353_v30 = vpop.f32.mrb[7].mxu0 }
 0x107   : > { %919 = vmatprep.mubr.msk.f32.mxu1 %vm364_vm1, %v353_v30 }
 0x108   : > { %920 = vmatmul.mubr.msk.f32.gmra.mrb[6].mxu1 %vm364_vm1, %v905_v29 }
 0x1cf   : > { %v912_v31 = vpop.f32.mrb[0].mxu1 }
 0x1d0   : > { %v455_v32 = vpop.f32.mrb[1].mxu1 }
 0x1d3   : > { %v915_v33 = vpop.f32.mrb[2].mxu1 }
 0x1d4   : > { %v495_v34 = vmax.f32 %v912_v31, %v915_v33  ;;  %v497_v35 = vmin.f32 %v912_v31, %v915_v33  ;;  %v465_v36 = vpop.f32.mrb[3].mxu1 }
 0x1d5   : > { %v494_v37 = vmax.f32 %v455_v32, %v465_v36  ;;  %v496_v38 = vmin.f32 %v455_v32, %v465_v36 }
 0x1d7   : > { %v918_v39 = vpop.f32.mrb[4].mxu1 }
 0x1d8   : > { %v475_v40 = vpop.f32.mrb[5].mxu1 }
 0x1db   : > { %v921_v46 = vpop.f32.mrb[6].mxu1 }
 0x1dc   : > { %v499_v47 = vmax.f32 %v918_v39, %v921_v46  ;;  %v501_v48 = vmin.f32 %v918_v39, %v921_v46  ;;  %v485_v49 = vpop.f32.mrb[7].mxu1 }
 0x1dd   : > { %v498_v52 = vmax.f32 %v475_v40, %v485_v49  ;;  %v500_v53 = vmin.f32 %v475_v40, %v485_v49 }
 0x1de   : > { %v503_v55 = vmax.f32 %v495_v34, %v501_v48  ;;  %v505_v56 = vmin.f32 %v495_v34, %v501_v48  ;;  %v507_v57 = vmax.f32 %v497_v35, %v499_v47  ;;  %v509_v58 = vmin.f32 %v497_v35, %v499_v47 }
 0x1df   : > { %v502_v59 = vmax.f32 %v494_v37, %v500_v53  ;;  %v504_v60 = vmin.f32 %v494_v37, %v500_v53  ;;  %v506_v61 = vmax.f32 %v496_v38, %v498_v52  ;;  %v508_v62 = vmin.f32 %v496_v38, %v498_v52 }
 0x1e0   : > { %v511_v63 = vmax.f32 %v503_v55, %v507_v57  ;;  %v513_v0 = vmin.f32 %v503_v55, %v507_v57  ;;  %v515_v1 = vmax.f32 %v505_v56, %v509_v58 }
 0x1e1   : > { %v510_v3 = vmax.f32 %v502_v59, %v506_v61  ;;  %v512_v4 = vmin.f32 %v502_v59, %v506_v61  ;;  %v514_v5 = vmax.f32 %v504_v60, %v508_v62 }
 0x1e2   : > { %v584_v6 = vcombine.high %v511_v63, %v515_v1  ;;  %v599_v8 = vcombine.high %v513_v0, %v1030_v7  ;;  %v583_v9 = vcombine.low %v511_v63, %v515_v1  ;;  %v606_v17 = vrot.slane %v513_v0, %v523_v2 }
 0x1e3   : > { %v516_v10 = vcombine.low %v510_v3, %v514_v5  ;;  %v517_v11 = vcombine.high %v510_v3, %v514_v5  ;;  %v532_v12 = vcombine.high %v512_v4, %v1030_v7  ;;  %v539_v18 = vrot.slane %v512_v4, %v523_v2 }
 0x1e4   : > { %v598_v14 = vrot.slane %v584_v6, %v523_v2  ;;  %v613_v15 = vrot.slane %v599_v8, %v523_v2  ;;  %v591_v16 = vrot.slane %v583_v9, %v523_v2 }
 0x1e5   : > { %v531_v19 = vrot.slane %v517_v11, %v523_v2  ;;  %v546_v20 = vrot.slane %v532_v12, %v523_v2  ;;  %v524_v21 = vrot.slane %v516_v10, %v523_v2 }
 0x1e6   : > { %v631_v22 = vcombine.high %v598_v14, %v613_v15  ;;  %v630_v23 = vcombine.low %v598_v14, %v613_v15  ;;  %v615_v24 = vcombine.high %v591_v16, %v606_v17  ;;  %v614_v25 = vcombine.low %v591_v16, %v606_v17 }
 0x1e7   : > { %v564_v26 = vcombine.high %v531_v19, %v546_v20  ;;  %v548_v27 = vcombine.high %v524_v21, %v539_v18  ;;  %v547_v28 = vcombine.low %v524_v21, %v539_v18  ;;  %v563_v29 = vcombine.low %v531_v19, %v546_v20 }
 0x1e8   : > { %v645_v30 = vrot.slane %v631_v22, %v554_v13  ;;  %v629_v31 = vrot.slane %v615_v24, %v554_v13  ;;  %v622_v34 = vrot.slane %v614_v25, %v554_v13  ;;  %v638_v38 = vrot.slane %v630_v23, %v554_v13 }
 0x1e9   : > { %v578_v32 = vrot.slane %v564_v26, %v554_v13  ;;  %v562_v33 = vrot.slane %v548_v27, %v554_v13  ;;  %v555_v35 = vrot.slane %v547_v28, %v554_v13  ;;  %v571_v39 = vrot.slane %v563_v29, %v554_v13 }
 0x1ea   : > { %691 = vrot.lane.b32.xlu1 %v645_v30, %s1031_s5  ;;  %679 = vrot.lane.b32.xlu0 %v629_v31, %s1031_s5  ;;  %v646_v36 = vcombine.high %v622_v34, %v1030_v7  ;;  %v648_v40 = vcombine.high %v638_v38, %v1030_v7  ;;  %v649_v44 = vcombine.high %v645_v30, %v1030_v7 }
 0x1eb   : > { %v579_v37 = vcombine.high %v555_v35, %v1030_v7  ;;  %v581_v41 = vcombine.high %v571_v39, %v1030_v7  ;;  %v582_v42 = vcombine.high %v578_v32, %v1030_v7  ;;  %v580_v43 = vcombine.high %v562_v33, %v1030_v7 }
 0x1ec   : > { %v647_v45 = vcombine.high %v629_v31, %v1030_v7 }
 0x1ee   : > { %667 = vrot.lane.b32.xlu1 %v578_v32, %s1031_s5  ;;  %655 = vrot.lane.b32.xlu0 %v562_v33, %s1031_s5 }
 0x1f2   : > { %675 = vrot.lane.b32.xlu1 %v646_v36, %s1032_s6  ;;  %651 = vrot.lane.b32.xlu0 %v579_v37, %s1032_s6 }
 0x1f6   : > { %687 = vrot.lane.b32.xlu1 %v648_v40, %s1032_s6  ;;  %663 = vrot.lane.b32.xlu0 %v581_v41, %s1032_s6 }
 0x1fa   : > { %671 = vrot.lane.b32.xlu1 %v582_v42, %s1033_s7  ;;  %659 = vrot.lane.b32.xlu0 %v580_v43, %s1033_s7 }
 0x1fe   : > { %695 = vrot.lane.b32.xlu1 %v649_v44, %s1033_s7  ;;  %683 = vrot.lane.b32.xlu0 %v647_v45, %s1033_s7 }
 0x25c   : > { %v692_v46 = vpop.permute.xlu1 %691  ;;  %v680_v47 = vpop.permute.xlu0 %679 }
 0x260   : > { %v668_v48 = vpop.permute.xlu1 %667  ;;  %v656_v49 = vpop.permute.xlu0 %655 }
 0x264   : > { %v676_v50 = vpop.permute.xlu1 %675  ;;  %v652_v51 = vpop.permute.xlu0 %651 }
 0x265   : > { %v699_v54 = vsel %vm698_vm2, %v555_v35, %v652_v51  ;;  %v706_v60 = vsel %vm698_vm2, %v622_v34, %v676_v50 }
 0x266   : > { %v700_v58 = vsel %vm232_vm0, %v699_v54, %v656_v49  ;;  %v707_v3 = vsel %vm232_vm0, %v706_v60, %v680_v47 }
 0x268   : > { %v688_v52 = vpop.permute.xlu1 %687  ;;  %v664_v53 = vpop.permute.xlu0 %663 }
 0x269   : > { %v703_v55 = vsel %vm698_vm2, %v571_v39, %v664_v53  ;;  %v709_v61 = vsel %vm698_vm2, %v638_v38, %v688_v52 }
 0x26a   : > { %v704_v57 = vsel %vm232_vm0, %v703_v55, %v668_v48  ;;  %v710_v1 = vsel %vm232_vm0, %v709_v61, %v692_v46 }
 0x26c   : > { %v672_v56 = vpop.permute.xlu1 %671  ;;  %v660_v59 = vpop.permute.xlu0 %659 }
 0x26d   : > { %v705_v62 = vsel %vm701_vm3, %v704_v57, %v672_v56  ;;  %v702_v63 = vsel %vm701_vm3, %v700_v58, %v660_v59 }
 0x26e   : > { %v716_v0 = vcombine.low %v702_v63, %v705_v62 }
 0x270   : > { %720 = vst [vmem:[%s214_s19] sm:$0x77] %v716_v0  ;;  %v696_v2 = vpop.permute.xlu1 %695  ;;  %v684_v4 = vpop.permute.xlu0 %683 }
 0x271   : > { %v711_v5 = vsel %vm701_vm3, %v710_v1, %v696_v2  ;;  %v708_v6 = vsel %vm701_vm3, %v707_v3, %v684_v4 }
 0x272   : > { %v717_v7 = vcombine.low %v708_v6, %v711_v5 }
 0x274   : > { %721 = vst [vmem:[%s214_s19 + $0x8] sm:$0x77] %v717_v7 }
 0x275 PF: > { %s13_s16 = sadd.s32 1, %s1026_s16   ;;  %s1160_s12 = smov %s1018_s14 }
 0x276   : > { %p10_p8 = scmp.ge.s32.totalorder %s13_s16, 6   ;;  %s1161_s13 = smov %s1022_s15 }
 0x277   : > { %s1162_s14 = smov %s1165_s17  ;;  %s1163_s15 = smov %s1169_s18 }
 0x278   :  { %12 = sbr.rel (!%p10_p8) target bundleno = 3 (0x3), region = 65 }

// kernel: tpu_custom_call.1
= control target key start
LH: loop header
LB: loop body
LE: loop exit
PB: predicated region body
PF: predicated region fallthrough
CT: control target
= control target key end

     0   :  { %s1051_s12 = smov 0   ;;  %s1053_s13 = smov 0   ;;  %s1153_s0 = inlined_call_operand.vmem [shape: f32[2,64,16], index: 0, kind: input, shape index: {}]   ;;  %s1154_s1 = inlined_call_operand.vmem [shape: f32[128,64], index: 1, kind: input, shape index: {}]   ;;  %s1155_s2 = inlined_call_operand.vmem [shape: f32[16,32], index: 2, kind: input, shape index: {}]   ;;  %s1156_s3 = inlined_call_operand.vmem [shape: f32[2,3,1024], index: 3, kind: output, shape index: {}]  }
   0x1   :  { %s1055_s14 = smov 0   ;;  %s1057_s15 = smov 0  }
   0x2   :  { %s1059_s16 = smov 0  }
   0x3 LB: > { %s22_s17 = sadd.s32 1, %s1015_s14  ;;  %s25_s18 = sadd.s32 1, %s1019_s15  ;;  %s1023_s16 = sphi %s1059_s16, %s13_s16   ;;  %s1019_s15 = sphi %s1057_s15, %s1160_s15   ;;  %s1015_s14 = sphi %s1055_s14, %s1159_s14   ;;  %s1011_s13 = sphi %s1053_s13, %s1158_s13   ;;  %s1007_s12 = sphi %s1051_s12, %s1157_s12  }
   0x4   : > { %p23_p0 = scmp.ge.s32.totalorder %s22_s17, 2  ;;  %p822_p1 = scmp.ge.s32.totalorder %s1023_s16, 1 }
   0x5   : > { %p162_p2 = scmp.lt.s32.totalorder %s1023_s16, 5 }
   0x6   : > { %s1162_s17 = smov (%p23_p0, %s22_s17), 0  ;;  %s1164_s18 = smov (!%p23_p0, %s25_s18), %s1019_s15 }
   0x7   : > { %p163_p3 = pnand %p822_p1, %p162_p2  ;;  %p27_p4 = scmp.ge.s32.totalorder %s1164_s18, 2 }
   0x8   : > { %p195_p5 = scmp.lt.s32.totalorder (!%p163_p3), %s1011_s13, 1  ;;  %s825_s19 = sshll.u32 (!%p163_p3), %s1007_s12, 3  ;;  %v362_v0 = vld [vmem:[%s1155_s2] sm:$0xff] (!%p163_p3)  ;;  %v363_v1 = vld [vmem:[%s1155_s2 + $0x8] sm:$0xff] (!%p163_p3)  ;;  %vm232_vm0 = vcmask (!%p163_p3), 523264   ;;  %vm364_vm1 = vcmask (!%p163_p3), 130048   ;;  %v521_v43 = vlaneseq (!%p163_p3) }
   0x9   : > { %s1166_s18 = smov (%p27_p4, %s1164_s18), 0  ;;  %166 = sbr.rel (%p163_p3) target bundleno = 629 (0x275), region = 32 }
   0xa   : > { %p201_p6 = scmp.lt.s32.totalorder (!%p163_p3), %s825_s19, 15  ;;  %v935_v2 = vpack.c.bf16 (!%p163_p3), %v363_v1, %v362_v0  ;;  %v1025_v41 = vmov (!%p163_p3), 1983009808   ;;  %v1026_v44 = vmov (!%p163_p3), 1934713408   ;;  %v522_v51 = vshrl.u32 (!%p163_p3), %v521_v43, 7 }
   0xb   : > { %v519_v42 = vunpack.c.l.s4 (!%p163_p3), %v1025_v41  ;;  %v550_v45 = vunpack.c.l.s4 (!%p163_p3), %v1026_v44  ;;  %s1028_s5 = smov (!%p163_p3), 64   ;;  %s1029_s6 = smov (!%p163_p3), 32   ;;  %vm698_vm2 = vcmask (!%p163_p3), 261120   ;;  %vm701_vm3 = vcmask (!%p163_p3), 785408  }
   0xc   : > { %936 = vmatprep.subr.bf16.mxu1 (!%p163_p3), %v935_v2  ;;  %s1030_s7 = smov (!%p163_p3), 96   ;;  %s827_s8 = sshll.u32 (!%p163_p3), %s1007_s12, 2 }
   0xd   : > { %938 = vmatpush3.bf16.msra.mxu1 (!%p163_p3), %v935_v2  ;;  %v520_v50 = vunpack.c.0.s8 (!%p163_p3), %v519_v42  ;;  %v551_v54 = vunpack.c.0.s8 (!%p163_p3), %v550_v45  ;;  %p209_p7 = scmp.lt.s32.totalorder (!%p163_p3), %s827_s8, 7 }
   0xf   : > { %v523_v2 = vsub.s32 (!%p163_p3), %v520_v50, %v522_v51 }
  0x10   : > { %s1168_s13 = smov (!%p195_p5, %s1011_s13), 1  ;;  %s1170_s19 = smov (!%p201_p6, %s825_s19), 15 }
  0x11   : > { %s848_s24 = sshll.u32 %s1168_s13, 6  ;;  %s826_s28 = sshll.u32 %s1170_s19, 3 }
  0x12   : > { %s199_s27 = scalar_lea.vmem %s1153_s0, %s848_s24  ;;  %s1099_s4 = scalar_lea.vmem %s1154_s1, %s826_s28 }
  0x13   : > { %v224_v3 = vld [vmem:[%s199_s27] sm:$0xff]  ;;  %v225_v4 = vld [vmem:[%s199_s27 + $0x8] sm:$0xff]  ;;  %v226_v5 = vld [vmem:[%s199_s27 + $0x10] sm:$0xff]  ;;  %s1172_s8 = smov (!%p209_p7, %s827_s8), 7  ;;  %s828_s9 = sshll.u32 %s1168_s13, 3 }
  0x14   : > { %v919_v6 = vpack.c.bf16 %v225_v4, %v224_v3  ;;  %v227_v7 = vld [vmem:[%s199_s27 + $0x18] sm:$0xff]  ;;  %v228_v9 = vld [vmem:[%s199_s27 + $0x20] sm:$0xff]  ;;  %v229_v10 = vld [vmem:[%s199_s27 + $0x28] sm:$0xff]  ;;  %s212_s10 = sadd.s32 %s828_s9, %s1172_s8 }
  0x15   : > { %v923_v8 = vpack.c.bf16 %v227_v7, %v226_v5  ;;  %v216_v11 = vld [vmem:[%s1099_s4] sm:$0xff]  ;;  %v927_v12 = vpack.c.bf16 %v229_v10, %v228_v9  ;;  %v230_v13 = vld [vmem:[%s199_s27 + $0x30] sm:$0xff]  ;;  %v231_v14 = vld [vmem:[%s199_s27 + $0x38] sm:$0xff]  ;;  %v1027_v7 = vmov 0.0   ;;  %s829_s11 = sshll.u32 %s212_s10, 2 }
  0x16   : > { %920 = vmatprep.subr.bf16.mxu0 %v919_v6  ;;  %891 = vmatprep.mubr.msk.f32.mxu0 %vm232_vm0, %v216_v11  ;;  %v931_v15 = vpack.c.bf16 %v231_v14, %v230_v13  ;;  %v217_v16 = vld [vmem:[%s1099_s4 + $0x8] sm:$0xff]  ;;  %v218_v17 = vld [vmem:[%s1099_s4 + $0x10] sm:$0xff]  ;;  %v219_v18 = vld [vmem:[%s1099_s4 + $0x18] sm:$0xff]  ;;  %v554_v13 = vsub.s32 %v551_v54, %v522_v51  ;;  %s214_s19 = scalar_lea.vmem %s1156_s3, %s829_s11 }
  0x17   : > { %922 = vmatpush3.bf16.msra.mxu0 %v919_v6  ;;  %v220_v19 = vld [vmem:[%s1099_s4 + $0x20] sm:$0xff]  ;;  %v221_v20 = vld [vmem:[%s1099_s4 + $0x28] sm:$0xff]  ;;  %v222_v21 = vld [vmem:[%s1099_s4 + $0x30] sm:$0xff] }
  0x18   : > { %924 = vmatprep.subr.bf16.mxu0 %v923_v8  ;;  %v223_v22 = vld [vmem:[%s1099_s4 + $0x38] sm:$0xff] }
  0x1b   : > { %926 = vmatpush3.bf16.msra.mxu0 %v923_v8 }
  0x1c   : > { %928 = vmatprep.subr.bf16.mxu0 %v927_v12 }
  0x1f   : > { %930 = vmatpush3.bf16.msra.mxu0 %v927_v12 }
  0x20   : > { %932 = vmatprep.subr.bf16.mxu0 %v931_v15 }
  0x23   : > { %934 = vmatpush3.bf16.msra.mxu0 %v931_v15 }
  0x26   : > { %892 = vmatmul.mubr.msk.f32.vlgmr.msra.gmra.mrb[0].mxu0 %vm232_vm0, %v217_v16 }
  0x27   : > { %894 = vmatprep.mubr.msk.f32.mxu0 %vm232_vm0, %v218_v17 }
  0x2a   : > { %895 = vmatmul.mubr.msk.f32.gmra.mrb[2].mxu0 %vm232_vm0, %v219_v18 }
  0x2b   : > { %897 = vmatprep.mubr.msk.f32.mxu0 %vm232_vm0, %v220_v19 }
  0x2e   : > { %898 = vmatmul.mubr.msk.f32.gmra.mrb[4].mxu0 %vm232_vm0, %v221_v20 }
  0x2f   : > { %900 = vmatprep.mubr.msk.f32.mxu0 %vm232_vm0, %v222_v21 }
  0x32   : > { %901 = vmatmul.mubr.msk.f32.gmra.mrb[6].mxu0 %vm232_vm0, %v223_v22 }
  0xf9   : > { %v893_v23 = vpop.f32.mrb[0].mxu0 }
  0xfa   : > { %v323_v24 = vpop.f32.mrb[1].mxu0 }
  0xfb   : > { %907 = vmatprep.mubr.msk.f32.mxu1 %vm364_vm1, %v323_v24 }
  0xfc   : > { %908 = vmatmul.mubr.msk.f32.vlgmr.msra.gmra.mrb[0].mxu1 %vm364_vm1, %v893_v23 }
  0xfd   : > { %v896_v25 = vpop.f32.mrb[2].mxu0 }
  0xfe   : > { %v333_v26 = vpop.f32.mrb[3].mxu0 }
  0xff   : > { %910 = vmatprep.mubr.msk.f32.mxu1 %vm364_vm1, %v333_v26 }
 0x100   : > { %911 = vmatmul.mubr.msk.f32.gmra.mrb[2].mxu1 %vm364_vm1, %v896_v25 }
 0x101   : > { %v899_v27 = vpop.f32.mrb[4].mxu0 }
 0x102   : > { %v343_v28 = vpop.f32.mrb[5].mxu0 }
 0x103   : > { %913 = vmatprep.mubr.msk.f32.mxu1 %vm364_vm1, %v343_v28 }
 0x104   : > { %914 = vmatmul.mubr.msk.f32.gmra.mrb[4].mxu1 %vm364_vm1, %v899_v27 }
 0x105   : > { %v902_v29 = vpop.f32.mrb[6].mxu0 }
 0x106   : > { %v353_v30 = vpop.f32.mrb[7].mxu0 }
 0x107   : > { %916 = vmatprep.mubr.msk.f32.mxu1 %vm364_vm1, %v353_v30 }
 0x108   : > { %917 = vmatmul.mubr.msk.f32.gmra.mrb[6].mxu1 %vm364_vm1, %v902_v29 }
 0x1cf   : > { %v909_v31 = vpop.f32.mrb[0].mxu1 }
 0x1d0   : > { %v455_v32 = vpop.f32.mrb[1].mxu1 }
 0x1d3   : > { %v912_v33 = vpop.f32.mrb[2].mxu1 }
 0x1d4   : > { %v495_v34 = vmax.f32 %v909_v31, %v912_v33  ;;  %v497_v35 = vmin.f32 %v909_v31, %v912_v33  ;;  %v465_v36 = vpop.f32.mrb[3].mxu1 }
 0x1d5   : > { %v494_v37 = vmax.f32 %v455_v32, %v465_v36  ;;  %v496_v38 = vmin.f32 %v455_v32, %v465_v36 }
 0x1d7   : > { %v915_v39 = vpop.f32.mrb[4].mxu1 }
 0x1d8   : > { %v475_v40 = vpop.f32.mrb[5].mxu1 }
 0x1db   : > { %v918_v46 = vpop.f32.mrb[6].mxu1 }
 0x1dc   : > { %v499_v47 = vmax.f32 %v915_v39, %v918_v46  ;;  %v501_v48 = vmin.f32 %v915_v39, %v918_v46  ;;  %v485_v49 = vpop.f32.mrb[7].mxu1 }
 0x1dd   : > { %v498_v52 = vmax.f32 %v475_v40, %v485_v49  ;;  %v500_v53 = vmin.f32 %v475_v40, %v485_v49 }
 0x1de   : > { %v503_v55 = vmax.f32 %v495_v34, %v501_v48  ;;  %v505_v56 = vmin.f32 %v495_v34, %v501_v48  ;;  %v507_v57 = vmax.f32 %v497_v35, %v499_v47  ;;  %v509_v58 = vmin.f32 %v497_v35, %v499_v47 }
 0x1df   : > { %v502_v59 = vmax.f32 %v494_v37, %v500_v53  ;;  %v504_v60 = vmin.f32 %v494_v37, %v500_v53  ;;  %v506_v61 = vmax.f32 %v496_v38, %v498_v52  ;;  %v508_v62 = vmin.f32 %v496_v38, %v498_v52 }
 0x1e0   : > { %v511_v63 = vmax.f32 %v503_v55, %v507_v57  ;;  %v513_v0 = vmin.f32 %v503_v55, %v507_v57  ;;  %v515_v1 = vmax.f32 %v505_v56, %v509_v58 }
 0x1e1   : > { %v510_v3 = vmax.f32 %v502_v59, %v506_v61  ;;  %v512_v4 = vmin.f32 %v502_v59, %v506_v61  ;;  %v514_v5 = vmax.f32 %v504_v60, %v508_v62 }
 0x1e2   : > { %v584_v6 = vcombine.high %v511_v63, %v515_v1  ;;  %v599_v8 = vcombine.high %v513_v0, %v1027_v7  ;;  %v583_v9 = vcombine.low %v511_v63, %v515_v1  ;;  %v606_v17 = vrot.slane %v513_v0, %v523_v2 }
 0x1e3   : > { %v516_v10 = vcombine.low %v510_v3, %v514_v5  ;;  %v517_v11 = vcombine.high %v510_v3, %v514_v5  ;;  %v532_v12 = vcombine.high %v512_v4, %v1027_v7  ;;  %v539_v18 = vrot.slane %v512_v4, %v523_v2 }
 0x1e4   : > { %v598_v14 = vrot.slane %v584_v6, %v523_v2  ;;  %v613_v15 = vrot.slane %v599_v8, %v523_v2  ;;  %v591_v16 = vrot.slane %v583_v9, %v523_v2 }
 0x1e5   : > { %v531_v19 = vrot.slane %v517_v11, %v523_v2  ;;  %v546_v20 = vrot.slane %v532_v12, %v523_v2  ;;  %v524_v21 = vrot.slane %v516_v10, %v523_v2 }
 0x1e6   : > { %v631_v22 = vcombine.high %v598_v14, %v613_v15  ;;  %v630_v23 = vcombine.low %v598_v14, %v613_v15  ;;  %v615_v24 = vcombine.high %v591_v16, %v606_v17  ;;  %v614_v25 = vcombine.low %v591_v16, %v606_v17 }
 0x1e7   : > { %v564_v26 = vcombine.high %v531_v19, %v546_v20  ;;  %v548_v27 = vcombine.high %v524_v21, %v539_v18  ;;  %v547_v28 = vcombine.low %v524_v21, %v539_v18  ;;  %v563_v29 = vcombine.low %v531_v19, %v546_v20 }
 0x1e8   : > { %v645_v30 = vrot.slane %v631_v22, %v554_v13  ;;  %v629_v31 = vrot.slane %v615_v24, %v554_v13  ;;  %v622_v34 = vrot.slane %v614_v25, %v554_v13  ;;  %v638_v38 = vrot.slane %v630_v23, %v554_v13 }
 0x1e9   : > { %v578_v32 = vrot.slane %v564_v26, %v554_v13  ;;  %v562_v33 = vrot.slane %v548_v27, %v554_v13  ;;  %v555_v35 = vrot.slane %v547_v28, %v554_v13  ;;  %v571_v39 = vrot.slane %v563_v29, %v554_v13 }
 0x1ea   : > { %691 = vrot.lane.b32.xlu1 %v645_v30, %s1028_s5  ;;  %679 = vrot.lane.b32.xlu0 %v629_v31, %s1028_s5  ;;  %v646_v36 = vcombine.high %v622_v34, %v1027_v7  ;;  %v648_v40 = vcombine.high %v638_v38, %v1027_v7  ;;  %v649_v44 = vcombine.high %v645_v30, %v1027_v7 }
 0x1eb   : > { %v579_v37 = vcombine.high %v555_v35, %v1027_v7  ;;  %v581_v41 = vcombine.high %v571_v39, %v1027_v7  ;;  %v582_v42 = vcombine.high %v578_v32, %v1027_v7  ;;  %v580_v43 = vcombine.high %v562_v33, %v1027_v7 }
 0x1ec   : > { %v647_v45 = vcombine.high %v629_v31, %v1027_v7 }
 0x1ee   : > { %667 = vrot.lane.b32.xlu1 %v578_v32, %s1028_s5  ;;  %655 = vrot.lane.b32.xlu0 %v562_v33, %s1028_s5 }
 0x1f2   : > { %675 = vrot.lane.b32.xlu1 %v646_v36, %s1029_s6  ;;  %651 = vrot.lane.b32.xlu0 %v579_v37, %s1029_s6 }
 0x1f6   : > { %687 = vrot.lane.b32.xlu1 %v648_v40, %s1029_s6  ;;  %663 = vrot.lane.b32.xlu0 %v581_v41, %s1029_s6 }
 0x1fa   : > { %671 = vrot.lane.b32.xlu1 %v582_v42, %s1030_s7  ;;  %659 = vrot.lane.b32.xlu0 %v580_v43, %s1030_s7 }
 0x1fe   : > { %695 = vrot.lane.b32.xlu1 %v649_v44, %s1030_s7  ;;  %683 = vrot.lane.b32.xlu0 %v647_v45, %s1030_s7 }
 0x25c   : > { %v692_v46 = vpop.permute.xlu1 %691  ;;  %v680_v47 = vpop.permute.xlu0 %679 }
 0x260   : > { %v668_v48 = vpop.permute.xlu1 %667  ;;  %v656_v49 = vpop.permute.xlu0 %655 }
 0x264   : > { %v676_v50 = vpop.permute.xlu1 %675  ;;  %v652_v51 = vpop.permute.xlu0 %651 }
 0x265   : > { %v699_v54 = vsel %vm698_vm2, %v555_v35, %v652_v51  ;;  %v706_v60 = vsel %vm698_vm2, %v622_v34, %v676_v50 }
 0x266   : > { %v700_v58 = vsel %vm232_vm0, %v699_v54, %v656_v49  ;;  %v707_v3 = vsel %vm232_vm0, %v706_v60, %v680_v47 }
 0x268   : > { %v688_v52 = vpop.permute.xlu1 %687  ;;  %v664_v53 = vpop.permute.xlu0 %663 }
 0x269   : > { %v703_v55 = vsel %vm698_vm2, %v571_v39, %v664_v53  ;;  %v709_v61 = vsel %vm698_vm2, %v638_v38, %v688_v52 }
 0x26a   : > { %v704_v57 = vsel %vm232_vm0, %v703_v55, %v668_v48  ;;  %v710_v1 = vsel %vm232_vm0, %v709_v61, %v692_v46 }
 0x26c   : > { %v672_v56 = vpop.permute.xlu1 %671  ;;  %v660_v59 = vpop.permute.xlu0 %659 }
 0x26d   : > { %v705_v62 = vsel %vm701_vm3, %v704_v57, %v672_v56  ;;  %v702_v63 = vsel %vm701_vm3, %v700_v58, %v660_v59 }
 0x26e   : > { %v716_v0 = vcombine.low %v702_v63, %v705_v62 }
 0x270   : > { %720 = vst [vmem:[%s214_s19] sm:$0x77] %v716_v0  ;;  %v696_v2 = vpop.permute.xlu1 %695  ;;  %v684_v4 = vpop.permute.xlu0 %683 }
 0x271   : > { %v711_v5 = vsel %vm701_vm3, %v710_v1, %v696_v2  ;;  %v708_v6 = vsel %vm701_vm3, %v707_v3, %v684_v4 }
 0x272   : > { %v717_v7 = vcombine.low %v708_v6, %v711_v5 }
 0x274   : > { %721 = vst [vmem:[%s214_s19 + $0x8] sm:$0x77] %v717_v7 }
 0x275 PF: > { %s13_s16 = sadd.s32 1, %s1023_s16   ;;  %s1157_s12 = smov %s1015_s14 }
 0x276   : > { %p10_p8 = scmp.ge.s32.totalorder %s13_s16, 6   ;;  %s1158_s13 = smov %s1019_s15 }
 0x277   : > { %s1159_s14 = smov %s1162_s17  ;;  %s1160_s15 = smov %s1166_s18 }
 0x278   :  { %12 = sbr.rel (!%p10_p8) target bundleno = 3 (0x3), region = 65 }

</bundles_post_ra>
